<compile_context>
chip_gen: v6e
topology: v6e:2x2x1
jax: 0.10.0
libtpu: 0.0.40
codegen_flags: <defaults>
</compile_context>

<pallas_src>
import functools

import jax
import jax.numpy as jnp
from jax import lax
from jax.experimental import pallas as pl
from jax.experimental.pallas import tpu as pltpu


# ----------------------------- Pallas kernel ------------------------------ #
def _cross_fusion_kernel(tpre_ref, tpost_ref, wqkv_ref, wp_ref, lnp_ref,
                         mch_ref, mhc_ref, o_ref, *, approx_recip):
    """One grid step = one (batch-tile, stream) pair.

    tpre_ref / tpost_ref : (TB, N, C)   original token tensors (f32)
    wqkv_ref             : (2, C, 3C)   [scale*W_q^T | W_k^T | W_v^T] per stream
    wp_ref               : (2, C, C)    W_proj^T per stream
    lnp_ref              : (2, 3, C)    [gamma; beta; proj_bias] per stream (f32)
    mch_ref / mhc_ref    : (C, H)/(H, C) one-hot channel<->head maps
    o_ref                : (1, TB, 1, C) new cls row for this (tile, stream)
    """
    tb, n_tok, c = tpre_ref.shape
    h = mch_ref.shape[1]
    s = pl.program_id(1)                       # 0 -> pre_fusion, 1 -> post_fusion
    is_pre = s == 0

    tp = tpre_ref[...]                         # (TB, N, C) f32
    tq = tpost_ref[...]                        # (TB, N, C) f32

    # --- token swap (torch.cat glue) via predicated select ---
    cls_src = jnp.where(is_pre, tp[:, 0:1, :], tq[:, 0:1, :])     # (TB, 1, C)
    body_src = jnp.where(is_pre, tq, tp)                          # (TB, N, C)

    tok = lax.broadcasted_iota(jnp.int32, (1, n_tok, c), 1)
    is_cls = tok == 0
    x = jnp.where(is_cls, cls_src, body_src)                      # swapped sequence

    # --- per-stream LayerNorm params / proj bias ---
    params = lnp_ref[s]                                           # (3, C)
    gamma = params[0:1, :].reshape(1, 1, c)
    beta = params[1:2, :].reshape(1, 1, c)
    bproj = params[2:3, :]                                        # (1, C)

    # --- LayerNorm over channels (f32 statistics) ---
    mean = jnp.mean(x, axis=-1, keepdims=True)
    var = jnp.mean((x - mean) ** 2, axis=-1, keepdims=True)
    xn = ((x - mean) * lax.rsqrt(var + 1e-5)) * gamma + beta      # (TB, N, C) f32

    # --- fused Q/K/V projection: one (TB*N, C) @ (C, 3C) matmul ---
    wdt = wqkv_ref.dtype
    xn_mm = xn.astype(wdt).reshape(tb * n_tok, c)
    qkv = jnp.dot(xn_mm, wqkv_ref[s],
                  preferred_element_type=jnp.float32)             # (TB*N, 3C) f32
    qkv = qkv.reshape(tb, n_tok, 3 * c)
    q = qkv[:, 0, 0:c]                                            # (TB, C)   scale folded in
    k = qkv[:, :, c:2 * c]                                        # (TB, N, C)
    v = qkv[:, :, 2 * c:]                                         # (TB, N, C)

    # --- per-head scores via one-hot channel->head map (MXU, f32 acc) ---
    qk = (q[:, None, :] * k).astype(wdt)                          # (TB, N, C)
    scores = jnp.dot(qk.reshape(tb * n_tok, c), mch_ref[...],
                     preferred_element_type=jnp.float32)          # (TB*N, H)
    scores = scores.reshape(tb, n_tok, h)

    # --- softmax over tokens (f32), reciprocal on the EUP ---
    scores = scores - jnp.max(scores, axis=1, keepdims=True)
    e = jnp.exp(scores)
    denom = jnp.sum(e, axis=1, keepdims=True)
    p = e * pl.reciprocal(denom, approx=approx_recip)             # (TB, N, H)

    # --- broadcast probs back to channels, weight values, sum over tokens ---
    pe = jnp.dot(p.astype(wdt).reshape(tb * n_tok, h), mhc_ref[...],
                 preferred_element_type=jnp.float32).reshape(tb, n_tok, c)
    attn_out = jnp.sum(pe * v, axis=1)                            # (TB, C) f32

    # --- output projection + residual with the swapped-sequence cls token ---
    proj = jnp.dot(attn_out.astype(wdt), wp_ref[s],
                   preferred_element_type=jnp.float32) + bproj    # (TB, C)
    cls_out = cls_src[:, 0, :] + proj                             # (TB, C)

    o_ref[...] = cls_out.reshape(1, tb, 1, c).astype(o_ref.dtype)


# ------------------------------ JAX wrapper -------------------------------- #
def _vmem_capacity_bytes():
    try:
        return int(pltpu.get_tpu_info().vmem_capacity_bytes)
    except Exception:
        return 64 * 1024 * 1024          # conservative (v7x per-TensorCore)


def _pick_batch_tile(B, N, C, H, wbytes, budget):
    """Largest divisor of B that fits the VMEM budget, preferring >=2 tiles."""
    def est(tb):
        inp = 2 * 2 * tb * N * C * 4                     # 2 inputs x double buffer
        outp = 2 * 2 * tb * C * 4                        # tiny cls-row output
        wts = 2 * (2 * (C * 3 * C + C * C) * wbytes      # resident weights (x2 buf)
                   + 2 * 3 * C * 4 + 2 * C * H * wbytes)
        temps = 12 * tb * N * C * 4                      # live f32 intermediates (rough)
        return inp + outp + wts + temps

    divisors = [d for d in range(1, B + 1) if B % d == 0]
    # prefer >=2 grid items on the parallel batch axis (feeds both v7x cores)
    cands = sorted([d for d in divisors if d <= max(B // 2, 1)], reverse=True) or [1]
    for tb in cands:
        if est(tb) <= budget:
            return tb
    return cands[-1]                                     # smallest divisor; best effort


def _pack_params(p_pre, p_post, scale, compute_dtype):
    """Per-stream weights: fused [scale*Wq^T | Wk^T | Wv^T], Wp^T, LN/bias."""
    def qkv_T(p):
        return jnp.concatenate(
            [scale * p["wq"].T, p["wk"].T, p["wv"].T], axis=1)    # (C, 3C)

    wqkv = jnp.stack([qkv_T(p_pre), qkv_T(p_post)]).astype(compute_dtype)   # (2,C,3C)
    wp = jnp.stack([p_pre["wp"].T, p_post["wp"].T]).astype(compute_dtype)   # (2,C,C)
    lnp = jnp.stack([
        jnp.stack([p_pre["gamma"], p_pre["beta"], p_pre["bp"]]),
        jnp.stack([p_post["gamma"], p_post["beta"], p_post["bp"]]),
    ]).astype(jnp.float32)                                                  # (2,3,C)
    return wqkv, wp, lnp


def _head_maps(C, num_heads, compute_dtype):
    head_dim = C // num_heads
    ch_head = jnp.arange(C)[:, None] // head_dim
    heads = jnp.arange(num_heads)[None, :]
    m_ch = (ch_head == heads).astype(compute_dtype)              # (C, H)
    m_hc = jnp.transpose(m_ch)                                   # (H, C)
    return m_ch, m_hc


def cross_fusion(t_pre, t_post, params_pre, params_post, num_heads,
                 *, compute_dtype=jnp.bfloat16, batch_tile=None):
    """Cross_Fusion.forward. Returns (pre_cross, post_cross), each (B, N, C) f32."""
    B, N, C = t_pre.shape
    assert t_post.shape == (B, N, C)
    assert C % num_heads == 0
    head_dim = C // num_heads
    scale = float(head_dim) ** -0.5

    t_pre = t_pre.astype(jnp.float32)
    t_post = t_post.astype(jnp.float32)

    wqkv, wp, lnp = _pack_params(params_pre, params_post, scale, compute_dtype)
    m_ch, m_hc = _head_maps(C, num_heads, compute_dtype)

    wbytes = jnp.dtype(compute_dtype).itemsize
    cap = _vmem_capacity_bytes()
    if batch_tile is not None:
        assert B % batch_tile == 0, "batch_tile must divide B"
        tb = batch_tile
    else:
        tb = _pick_batch_tile(B, N, C, num_heads, wbytes, int(cap * 0.55))
    num_bt = B // tb

    kernel = functools.partial(
        _cross_fusion_kernel, approx_recip=(compute_dtype != jnp.float32))

    out = pl.pallas_call(
        kernel,
        out_shape=jax.ShapeDtypeStruct((2, B, 1, C), jnp.float32),
        grid_spec=pltpu.PrefetchScalarGridSpec(
            num_scalar_prefetch=0,
            grid=(num_bt, 2),                         # (batch tiles, stream) — stream inner
            in_specs=[
                pl.BlockSpec((tb, N, C), lambda bt, s: (bt, 0, 0)),      # t_pre tile
                pl.BlockSpec((tb, N, C), lambda bt, s: (bt, 0, 0)),      # t_post tile
                pl.BlockSpec((2, C, 3 * C), lambda bt, s: (0, 0, 0)),    # fused W_qkv (resident)
                pl.BlockSpec((2, C, C), lambda bt, s: (0, 0, 0)),        # W_proj^T  (resident)
                pl.BlockSpec((2, 3, C), lambda bt, s: (0, 0, 0)),        # gamma/beta/bias
                pl.BlockSpec((C, num_heads), lambda bt, s: (0, 0)),      # channel->head map
                pl.BlockSpec((num_heads, C), lambda bt, s: (0, 0)),      # head->channel map
            ],
            out_specs=pl.BlockSpec((1, tb, 1, C), lambda bt, s: (s, bt, 0, 0)),
        ),
        compiler_params=pltpu.CompilerParams(
            dimension_semantics=("parallel", "arbitrary"),
            vmem_limit_bytes=int(cap * 0.8),
        ),
    )(t_pre, t_post, wqkv, wp, lnp, m_ch, m_hc)

    # Pass-through body tokens are never touched by the kernel; patch row 0 only.
    cls_pre = out[0]                                  # (B, 1, C)
    cls_post = out[1]
    pre_cross = lax.dynamic_update_slice(t_post, cls_pre, (0, 0, 0))
    post_cross = lax.dynamic_update_slice(t_pre, cls_post, (0, 0, 0))
    return pre_cross, post_cross


# --------------------------- pure-JAX reference ----------------------------- #
def _ref_block(x, params, num_heads):
    B, N, C = x.shape
    hd = C // num_heads
    scale = hd ** -0.5
    mean = jnp.mean(x, -1, keepdims=True)
    var = jnp.mean((x - mean) ** 2, -1, keepdims=True)
    xn = (x - mean) / jnp.sqrt(var + 1e-5) * params["gamma"] + params["beta"]
    q = (xn[:, 0:1] @ params["wq"].T).reshape(B, 1, num_heads, hd).transpose(0, 2, 1, 3)
    k = (xn @ params["wk"].T).reshape(B, N, num_heads, hd).transpose(0, 2, 1, 3)
    v = (xn @ params["wv"].T).reshape(B, N, num_heads, hd).transpose(0, 2, 1, 3)
    attn = jax.nn.softmax((q @ jnp.swapaxes(k, -2, -1)) * scale, axis=-1)
    o = (attn @ v).transpose(0, 2, 1, 3).reshape(B, 1, C)
    o = o @ params["wp"].T + params["bp"]
    return x[:, 0:1] + o


def _ref_cross_fusion(t_pre, t_post, p_pre, p_post, num_heads):
    tmp_pre = jnp.concatenate([t_pre[:, 0:1], t_post[:, 1:]], axis=1)
    tmp_post = jnp.concatenate([t_post[:, 0:1], t_pre[:, 1:]], axis=1)
    cls_pre = _ref_block(tmp_pre, p_pre, num_heads)
    cls_post = _ref_block(tmp_post, p_post, num_heads)
    return (jnp.concatenate([cls_pre, tmp_pre[:, 1:]], axis=1),
            jnp.concatenate([cls_post, tmp_post[:, 1:]], axis=1))


# ---------------------------------- main ------------------------------------ #
def _init_block_params(key, dim):
    ks = jax.random.split(key, 5)
    return {
        "gamma": jnp.ones((dim,), jnp.float32),
        "beta": jnp.zeros((dim,), jnp.float32),
        "wq": 0.02 * jax.random.normal(ks[0], (dim, dim), jnp.float32),
        "wk": 0.02 * jax.random.normal(ks[1], (dim, dim), jnp.float32),
        "wv": 0.02 * jax.random.normal(ks[2], (dim, dim), jnp.float32),
        "wp": 0.02 * jax.random.normal(ks[3], (dim, dim), jnp.float32),
        "bp": 0.01 * jax.random.normal(ks[4], (dim,), jnp.float32),
    }


if __name__ == "__main__":
    B, N, C = 2, 8, 128      # C = 128 -> lane-dense blocks; 8 heads of head_dim 16
    num_heads = 8

    key = jax.random.PRNGKey(0)
    k_pre, k_post, k_x1, k_x2 = jax.random.split(key, 4)
    params_pre = _init_block_params(k_pre, C)
    params_post = _init_block_params(k_post, C)

    t_pre = jax.random.normal(k_x1, (B, N, C), jnp.float32)
    t_post = jax.random.normal(k_x2, (B, N, C), jnp.float32)

    # default path: bf16 MXU inputs, f32 statistics/accumulation
    pre_bf, post_bf = cross_fusion(t_pre, t_post, params_pre, params_post, num_heads)
    # f32 path for tight numerical verification (exact reciprocal, f32 MXU inputs)
    pre_f32, post_f32 = cross_fusion(t_pre, t_post, params_pre, params_post, num_heads,
                                     compute_dtype=jnp.float32)
    jax.block_until_ready((pre_bf, post_bf, pre_f32, post_f32))

    ref_pre, ref_post = _ref_cross_fusion(t_pre, t_post, params_pre, params_post,
                                          num_heads)

    assert pre_bf.shape == (B, N, C) and post_bf.shape == (B, N, C)
    assert jnp.allclose(pre_f32, ref_pre, atol=1e-5, rtol=1e-5)
    assert jnp.allclose(post_f32, ref_post, atol=1e-5, rtol=1e-5)
    assert jnp.allclose(pre_bf, ref_pre, atol=1e-2, rtol=1e-2)
    assert jnp.allclose(post_bf, ref_post, atol=1e-2, rtol=1e-2)

    print("KERNEL_OK")
</pallas_src>

<mosaic_0001>
module attributes {stable_mosaic.version = 11 : i64} {
  func.func @_cross_fusion_kernel(%arg0: i32, %arg1: i32, %arg2: memref<1x8x128xf32, #tpu.memory_space<vmem>>, %arg3: memref<1x8x128xf32, #tpu.memory_space<vmem>>, %arg4: memref<2x128x384xbf16, #tpu.memory_space<vmem>>, %arg5: memref<2x128x128xbf16, #tpu.memory_space<vmem>>, %arg6: memref<2x3x128xf32, #tpu.memory_space<vmem>>, %arg7: memref<128x8xbf16, #tpu.memory_space<vmem>>, %arg8: memref<8x128xbf16, #tpu.memory_space<vmem>>, %arg9: memref<1x1x1x128xf32, #tpu.memory_space<vmem>>) attributes {dimension_semantics = [#tpu.dimension_semantics<parallel>, #tpu.dimension_semantics<arbitrary>], iteration_bounds = array<i64: 2, 2>, scalar_prefetch = 0 : i64, scratch_operands = 0 : i64, tpu.core_type = #tpu.core_type<tc>, window_params = [{transform_indices = @transform_0, window_bounds = array<i64: 1, 8, 128>}, {transform_indices = @transform_1, window_bounds = array<i64: 1, 8, 128>}, {pipeline_mode = #tpu.pipeline_mode<synchronous>, transform_indices = @transform_2, window_bounds = array<i64: 2, 128, 384>}, {pipeline_mode = #tpu.pipeline_mode<synchronous>, transform_indices = @transform_3, window_bounds = array<i64: 2, 128, 128>}, {pipeline_mode = #tpu.pipeline_mode<synchronous>, transform_indices = @transform_4, window_bounds = array<i64: 2, 3, 128>}, {pipeline_mode = #tpu.pipeline_mode<synchronous>, transform_indices = @transform_5, window_bounds = array<i64: 128, 8>}, {pipeline_mode = #tpu.pipeline_mode<synchronous>, transform_indices = @transform_6, window_bounds = array<i64: 8, 128>}, {transform_indices = @transform_7, window_bounds = array<i64: 1, 1, 1, 128>}]} {
    %c0_i32 = arith.constant 0 : i32
    %0 = arith.cmpi eq, %arg1, %c0_i32 : i32
    %c0 = arith.constant 0 : index
    %c0_0 = arith.constant 0 : index
    %c0_1 = arith.constant 0 : index
    %1 = vector.load %arg2[%c0, %c0_0, %c0_1] : memref<1x8x128xf32, #tpu.memory_space<vmem>>, vector<1x8x128xf32>
    %c0_2 = arith.constant 0 : index
    %c0_3 = arith.constant 0 : index
    %c0_4 = arith.constant 0 : index
    %2 = vector.load %arg3[%c0_2, %c0_3, %c0_4] : memref<1x8x128xf32, #tpu.memory_space<vmem>>, vector<1x8x128xf32>
    %3 = vector.extract_strided_slice %1 {offsets = [0, 0, 0], sizes = [1, 1, 128], strides = [1, 1, 1]} : vector<1x8x128xf32> to vector<1x1x128xf32>
    %4 = vector.extract_strided_slice %2 {offsets = [0, 0, 0], sizes = [1, 1, 128], strides = [1, 1, 1]} : vector<1x8x128xf32> to vector<1x1x128xf32>
    %5 = arith.select %0, %3, %4 : vector<1x1x128xf32>
    %6 = arith.select %0, %2, %1 : vector<1x8x128xf32>
    %7 = tpu.iota {dimensions = array<i32: 1>} : vector<1x8x128xi32>
    %c0_i32_5 = arith.constant 0 : i32
    %8 = vector.broadcast %c0_i32_5 : i32 to vector<1x8x128xi32>
    %9 = arith.cmpi eq, %7, %8 : vector<1x8x128xi32>
    %10 = vector.shape_cast %5 : vector<1x1x128xf32> to vector<1x1x128xf32>
    %11 = vector.broadcast %10 : vector<1x1x128xf32> to vector<1x8x128xf32>
    %12 = arith.select %9, %11, %6 : vector<1x8x128xi1>, vector<1x8x128xf32>
    %13 = arith.index_cast %arg1 : i32 to index
    %c0_6 = arith.constant 0 : index
    %c0_7 = arith.constant 0 : index
    %14 = vector.load %arg6[%13, %c0_6, %c0_7] : memref<2x3x128xf32, #tpu.memory_space<vmem>>, vector<1x3x128xf32>
    %15 = vector.shape_cast %14 : vector<1x3x128xf32> to vector<3x128xf32>
    %16 = vector.extract_strided_slice %15 {offsets = [0, 0], sizes = [1, 128], strides = [1, 1]} : vector<3x128xf32> to vector<1x128xf32>
    %17 = vector.shape_cast %16 : vector<1x128xf32> to vector<1x1x128xf32>
    %18 = vector.extract_strided_slice %15 {offsets = [1, 0], sizes = [1, 128], strides = [1, 1]} : vector<3x128xf32> to vector<1x128xf32>
    %19 = vector.shape_cast %18 : vector<1x128xf32> to vector<1x1x128xf32>
    %20 = vector.extract_strided_slice %15 {offsets = [2, 0], sizes = [1, 128], strides = [1, 1]} : vector<3x128xf32> to vector<1x128xf32>
    %cst = arith.constant dense<0.000000e+00> : vector<1x8xf32>
    %21 = vector.multi_reduction <add>, %12, %cst [2] : vector<1x8x128xf32> to vector<1x8xf32>
    %22 = vector.shape_cast %21 : vector<1x8xf32> to vector<1x8x1xf32>
    %cst_8 = arith.constant 1.280000e+02 : f32
    %23 = vector.broadcast %cst_8 : f32 to vector<1x8x1xf32>
    %24 = arith.divf %22, %23 : vector<1x8x1xf32>
    %25 = vector.broadcast %24 : vector<1x8x1xf32> to vector<1x8x128xf32>
    %26 = arith.subf %12, %25 : vector<1x8x128xf32>
    %27 = arith.mulf %26, %26 : vector<1x8x128xf32>
    %cst_9 = arith.constant dense<0.000000e+00> : vector<1x8xf32>
    %28 = vector.multi_reduction <add>, %27, %cst_9 [2] : vector<1x8x128xf32> to vector<1x8xf32>
    %29 = vector.shape_cast %28 : vector<1x8xf32> to vector<1x8x1xf32>
    %cst_10 = arith.constant 1.280000e+02 : f32
    %30 = vector.broadcast %cst_10 : f32 to vector<1x8x1xf32>
    %31 = arith.divf %29, %30 : vector<1x8x1xf32>
    %32 = vector.broadcast %24 : vector<1x8x1xf32> to vector<1x8x128xf32>
    %33 = arith.subf %12, %32 : vector<1x8x128xf32>
    %cst_11 = arith.constant 9.99999974E-6 : f32
    %34 = vector.broadcast %cst_11 : f32 to vector<1x8x1xf32>
    %35 = arith.addf %31, %34 : vector<1x8x1xf32>
    %36 = math.rsqrt %35 : vector<1x8x1xf32>
    %37 = vector.broadcast %36 : vector<1x8x1xf32> to vector<1x8x128xf32>
    %38 = arith.mulf %33, %37 : vector<1x8x128xf32>
    %39 = vector.broadcast %17 : vector<1x1x128xf32> to vector<1x8x128xf32>
    %40 = arith.mulf %38, %39 : vector<1x8x128xf32>
    %41 = vector.broadcast %19 : vector<1x1x128xf32> to vector<1x8x128xf32>
    %42 = arith.addf %40, %41 : vector<1x8x128xf32>
    %43 = arith.truncf %42 : vector<1x8x128xf32> to vector<1x8x128xbf16>
    %44 = vector.shape_cast %43 : vector<1x8x128xbf16> to vector<8x128xbf16>
    %45 = arith.index_cast %arg1 : i32 to index
    %c0_12 = arith.constant 0 : index
    %c0_13 = arith.constant 0 : index
    %46 = vector.load %arg4[%45, %c0_12, %c0_13] : memref<2x128x384xbf16, #tpu.memory_space<vmem>>, vector<1x128x384xbf16>
    %47 = vector.shape_cast %46 : vector<1x128x384xbf16> to vector<128x384xbf16>
    %cst_14 = arith.constant dense<0.000000e+00> : vector<8x384xf32>
    %48 = tpu.matmul %44, %47, %cst_14 {dimension_numbers = #tpu.dot_dimension_numbers<[1], [0], [0], [1], [0, 0, 1, 1], [], []>} : vector<8x128xbf16>, vector<128x384xbf16>, vector<8x384xf32> -> vector<8x384xf32>
    %49 = vector.shape_cast %48 : vector<8x384xf32> to vector<1x8x384xf32>
    %50 = vector.extract_strided_slice %49 {offsets = [0, 0, 0], sizes = [1, 1, 128], strides = [1, 1, 1]} : vector<1x8x384xf32> to vector<1x1x128xf32>
    %51 = vector.shape_cast %50 : vector<1x1x128xf32> to vector<1x128xf32>
    %52 = vector.extract_strided_slice %49 {offsets = [0, 0, 128], sizes = [1, 8, 128], strides = [1, 1, 1]} : vector<1x8x384xf32> to vector<1x8x128xf32>
    %53 = vector.extract_strided_slice %49 {offsets = [0, 0, 256], sizes = [1, 8, 128], strides = [1, 1, 1]} : vector<1x8x384xf32> to vector<1x8x128xf32>
    %54 = vector.shape_cast %51 : vector<1x128xf32> to vector<1x1x128xf32>
    %55 = vector.broadcast %54 : vector<1x1x128xf32> to vector<1x8x128xf32>
    %56 = arith.mulf %55, %52 : vector<1x8x128xf32>
    %57 = arith.truncf %56 : vector<1x8x128xf32> to vector<1x8x128xbf16>
    %58 = vector.shape_cast %57 : vector<1x8x128xbf16> to vector<8x128xbf16>
    %c0_15 = arith.constant 0 : index
    %c0_16 = arith.constant 0 : index
    %59 = vector.load %arg7[%c0_15, %c0_16] : memref<128x8xbf16, #tpu.memory_space<vmem>>, vector<128x8xbf16>
    %cst_17 = arith.constant dense<0.000000e+00> : vector<8x8xf32>
    %60 = tpu.matmul %58, %59, %cst_17 {dimension_numbers = #tpu.dot_dimension_numbers<[1], [0], [0], [1], [0, 0, 1, 1], [], []>} : vector<8x128xbf16>, vector<128x8xbf16>, vector<8x8xf32> -> vector<8x8xf32>
    %61 = vector.shape_cast %60 : vector<8x8xf32> to vector<1x8x8xf32>
    %cst_18 = arith.constant dense<0xFF800000> : vector<1x8xf32>
    %62 = vector.multi_reduction <maximumf>, %61, %cst_18 [1] : vector<1x8x8xf32> to vector<1x8xf32>
    %63 = vector.shape_cast %62 : vector<1x8xf32> to vector<1x1x8xf32>
    %64 = vector.broadcast %63 : vector<1x1x8xf32> to vector<1x8x8xf32>
    %65 = arith.subf %61, %64 : vector<1x8x8xf32>
    %66 = math.exp %65 : vector<1x8x8xf32>
    %cst_19 = arith.constant dense<0.000000e+00> : vector<1x8xf32>
    %67 = vector.multi_reduction <add>, %66, %cst_19 [1] : vector<1x8x8xf32> to vector<1x8xf32>
    %68 = vector.shape_cast %67 : vector<1x8xf32> to vector<1x1x8xf32>
    %69 = tpu.reciprocal %68 {approx = true} : vector<1x1x8xf32> -> vector<1x1x8xf32>
    %70 = vector.broadcast %69 : vector<1x1x8xf32> to vector<1x8x8xf32>
    %71 = arith.mulf %66, %70 : vector<1x8x8xf32>
    %72 = arith.truncf %71 : vector<1x8x8xf32> to vector<1x8x8xbf16>
    %73 = vector.shape_cast %72 : vector<1x8x8xbf16> to vector<8x8xbf16>
    %c0_20 = arith.constant 0 : index
    %c0_21 = arith.constant 0 : index
    %74 = vector.load %arg8[%c0_20, %c0_21] : memref<8x128xbf16, #tpu.memory_space<vmem>>, vector<8x128xbf16>
    %cst_22 = arith.constant dense<0.000000e+00> : vector<8x128xf32>
    %75 = tpu.matmul %73, %74, %cst_22 {dimension_numbers = #tpu.dot_dimension_numbers<[1], [0], [0], [1], [0, 0, 1, 1], [], []>} : vector<8x8xbf16>, vector<8x128xbf16>, vector<8x128xf32> -> vector<8x128xf32>
    %76 = vector.shape_cast %75 : vector<8x128xf32> to vector<1x8x128xf32>
    %77 = arith.mulf %76, %53 : vector<1x8x128xf32>
    %cst_23 = arith.constant dense<0.000000e+00> : vector<1x128xf32>
    %78 = vector.multi_reduction <add>, %77, %cst_23 [1] : vector<1x8x128xf32> to vector<1x128xf32>
    %79 = arith.truncf %78 : vector<1x128xf32> to vector<1x128xbf16>
    %80 = arith.index_cast %arg1 : i32 to index
    %c0_24 = arith.constant 0 : index
    %c0_25 = arith.constant 0 : index
    %81 = vector.load %arg5[%80, %c0_24, %c0_25] : memref<2x128x128xbf16, #tpu.memory_space<vmem>>, vector<1x128x128xbf16>
    %82 = vector.shape_cast %81 : vector<1x128x128xbf16> to vector<128x128xbf16>
    %cst_26 = arith.constant dense<0.000000e+00> : vector<1x128xf32>
    %83 = tpu.matmul %79, %82, %cst_26 {dimension_numbers = #tpu.dot_dimension_numbers<[1], [0], [0], [1], [0, 0, 1, 1], [], []>} : vector<1x128xbf16>, vector<128x128xbf16>, vector<1x128xf32> -> vector<1x128xf32>
    %84 = arith.addf %83, %20 : vector<1x128xf32>
    %85 = vector.shape_cast %5 : vector<1x1x128xf32> to vector<1x128xf32>
    %86 = arith.addf %85, %84 : vector<1x128xf32>
    %87 = vector.shape_cast %86 : vector<1x128xf32> to vector<1x1x1x128xf32>
    %c0_27 = arith.constant 0 : index
    %c0_28 = arith.constant 0 : index
    %c0_29 = arith.constant 0 : index
    %c0_30 = arith.constant 0 : index
    %88 = vector.load %arg9[%c0_27, %c0_28, %c0_29, %c0_30] : memref<1x1x1x128xf32, #tpu.memory_space<vmem>>, vector<1x1x1x128xf32>
    tpu.vector_store %arg9[%c0_27, %c0_28, %c0_29, %c0_30], %87 {strides = array<i32>} : memref<1x1x1x128xf32, #tpu.memory_space<vmem>>, vector<1x1x1x128xf32>,
    return
  }
  func.func @transform_0(%arg0: i32, %arg1: i32) -> (i32, i32, i32) {
    %c0_i32 = arith.constant 0 : i32
    %c0_i32_0 = arith.constant 0 : i32
    %c0_i32_1 = arith.constant 0 : i32
    return %arg0, %c0_i32, %c0_i32_0 : i32, i32, i32
  }
  func.func @transform_1(%arg0: i32, %arg1: i32) -> (i32, i32, i32) {
    %c0_i32 = arith.constant 0 : i32
    %c0_i32_0 = arith.constant 0 : i32
    %c0_i32_1 = arith.constant 0 : i32
    return %arg0, %c0_i32, %c0_i32_0 : i32, i32, i32
  }
  func.func @transform_2(%arg0: i32, %arg1: i32) -> (i32, i32, i32) {
    %c0_i32 = arith.constant 0 : i32
    %c0_i32_0 = arith.constant 0 : i32
    %c0_i32_1 = arith.constant 0 : i32
    %c0_i32_2 = arith.constant 0 : i32
    return %c0_i32, %c0_i32_0, %c0_i32_1 : i32, i32, i32
  }
  func.func @transform_3(%arg0: i32, %arg1: i32) -> (i32, i32, i32) {
    %c0_i32 = arith.constant 0 : i32
    %c0_i32_0 = arith.constant 0 : i32
    %c0_i32_1 = arith.constant 0 : i32
    %c0_i32_2 = arith.constant 0 : i32
    return %c0_i32, %c0_i32_0, %c0_i32_1 : i32, i32, i32
  }
  func.func @transform_4(%arg0: i32, %arg1: i32) -> (i32, i32, i32) {
    %c0_i32 = arith.constant 0 : i32
    %c0_i32_0 = arith.constant 0 : i32
    %c0_i32_1 = arith.constant 0 : i32
    %c0_i32_2 = arith.constant 0 : i32
    return %c0_i32, %c0_i32_0, %c0_i32_1 : i32, i32, i32
  }
  func.func @transform_5(%arg0: i32, %arg1: i32) -> (i32, i32) {
    %c0_i32 = arith.constant 0 : i32
    %c0_i32_0 = arith.constant 0 : i32
    %c0_i32_1 = arith.constant 0 : i32
    return %c0_i32, %c0_i32_0 : i32, i32
  }
  func.func @transform_6(%arg0: i32, %arg1: i32) -> (i32, i32) {
    %c0_i32 = arith.constant 0 : i32
    %c0_i32_0 = arith.constant 0 : i32
    %c0_i32_1 = arith.constant 0 : i32
    return %c0_i32, %c0_i32_0 : i32, i32
  }
  func.func @transform_7(%arg0: i32, %arg1: i32) -> (i32, i32, i32, i32) {
    %c0_i32 = arith.constant 0 : i32
    %c0_i32_0 = arith.constant 0 : i32
    %c0_i32_1 = arith.constant 0 : i32
    return %arg1, %arg0, %c0_i32, %c0_i32_0 : i32, i32, i32, i32
  }
}

</mosaic_0001>

<bundles_post_ra>
// kernel: tpu_custom_call.1
= control target key start
LH: loop header
LB: loop body
LE: loop exit
PB: predicated region body
PF: predicated region fallthrough
CT: control target
= control target key end

     0   :  { %12 = vsyncpa [#allocation3], 0  ;;  %s1866_s0 = inlined_call_operand.vmem [shape: f32[2,8,128], index: 0, kind: input, shape index: {}]   ;;  %s1867_s1 = inlined_call_operand.vmem [shape: f32[2,8,128], index: 1, kind: input, shape index: {}]   ;;  %s1868_s2 = inlined_call_operand.hbm [shape: bf16[2,128,384], index: 2, kind: input, shape index: {}]   ;;  %s1869_s3 = inlined_call_operand.hbm [shape: bf16[2,128,128], index: 3, kind: input, shape index: {}]   ;;  %s1870_s4 = inlined_call_operand.vmem [shape: f32[2,3,128], index: 4, kind: input, shape index: {}]   ;;  %s1871_s5 = inlined_call_operand.vmem [shape: bf16[128,8], index: 5, kind: input, shape index: {}]   ;;  %s1872_s6 = inlined_call_operand.vmem [shape: bf16[8,128], index: 6, kind: input, shape index: {}]   ;;  %s1873_s7 = inlined_call_operand.hbm [shape: f32[2,2,1,128], index: 7, kind: output, shape index: {}]  }
   0x1   :  { %13 = vsyncpa [#allocation6], 0 }
   0x2   :  { %14 = vsyncpa [#allocation4], 0 }
   0x3   :  { %16 = vsyncpa [#allocation4 + $0x1], 0  ;;  %s1557_s24 = smov 0   ;;  %s1559_s25 = smov 0  }
   0x4   :  { %s1561_s26 = smov 0   ;;  %s1563_s27 = smov 0  }
   0x5   :  { %s1565_s28 = smov 0   ;;  %s1567_s29 = smov 0  }
   0x6   :  { %s1569_s30 = smov 0   ;;  %s1571_s8 = smov 0  }
   0x7 LB: > { %1877 = sst [smem:[#allocation11_spill]] %s1501_s30  ;;  %s1043_s9 = sadd.s32 4294967295, %s1505_s8   ;;  %s1505_s8 = sphi %s1571_s8, %s22_s8   ;;  %s1501_s30 = sphi %s1569_s30, %s1887_s30   ;;  %s1497_s29 = sphi %s1567_s29, %s1892_s29   ;;  %s1493_s28 = sphi %s1565_s28, %s1885_s28   ;;  %s1489_s27 = sphi %s1563_s27, %s1891_s27   ;;  %s1485_s26 = sphi %s1561_s26, %s1890_s26   ;;  %s1481_s25 = sphi %s1559_s25, %s1889_s25   ;;  %s1477_s24 = sphi %s1557_s24, %s1888_s24  }
   0x8   : > { %s1044_s10 = sadd.s32 4294967294, %s1505_s8   ;;  %s31_s11 = sadd.s32 1, %s1497_s29 }
   0x9   : > { %s34_s12 = sadd.s32 1, %s1501_s30  ;;  %p32_p0 = scmp.ge.s32.totalorder %s31_s11, 2 }
   0xa   : > { %s200_s13 = sadd.s32 1, %s1485_s26  ;;  %p210_p1 = scmp.ne.s32.totalorder %s1485_s26, %s1481_s25 }
   0xb   : > { %p211_p2 = scmp.eq.s32.totalorder %s1043_s9, 3  ;;  %s1894_s11 = smov (%p32_p0, %s31_s11), 0 }
   0xc   : > { %1878 = sst [smem:[#allocation12_spill]] %s1894_s11  ;;  %s1896_s12 = smov (!%p32_p0, %s34_s12), %s1501_s30 }
   0xd   : > { %s195_s14 = ssub.s32 %s1497_s29, %s1894_s11  ;;  %p1609_p3 = por %p211_p2, %p210_p1 }
   0xe   : > { %p36_p4 = scmp.ge.s32.totalorder %s1896_s12, 2  ;;  %p216_p5 = scmp.ne.s32.totalorder %s1481_s25, %s1477_s24 }
   0xf   : > { %p217_p6 = scmp.eq.s32.totalorder %s1044_s10, 3  ;;  %p1045_p7 = scmp.ge.s32.totalorder %s1505_s8, 1 }
  0x10   : > { %s1898_s12 = smov (%p36_p4, %s1896_s12), 0  ;;  %p224_p9 = scmp.lt.s32.totalorder %s1505_s8, 5 }
  0x11   : > { %1880 = sst [smem:[#allocation13_spill]] %s1898_s12  ;;  %p1618_p8 = por %p217_p6, %p216_p5 }
  0x12   : > { %s196_s17 = ssub.s32 %s1501_s30, %s1898_s12  ;;  %p1625_p10 = pnand %p1045_p7, %p224_p9 }
  0x13   : > { %s197_s18 = sor.u32 %s196_s17, %s195_s14  ;;  %p1629_p12 = scmp.eq.s32.totalorder %s1043_s9, 0 }
  0x14   : > { %p198_p11 = scmp.eq.s32.totalorder %s197_s18, 0  ;;  %p1210_p13 = pneg %p1625_p10 }
  0x15   : > { %s1507_s22 = smov [#allocation2]  }
  0x16   : > { %s1636_s21 = scalar_select %p198_p11, %s1485_s26, %s200_s13  }
  0x17   : > { %s236_s23 = sshll.u32 %s1507_s22, 4  ;;  %p1640_p0 = pnand %p1629_p12, %p1210_p13  ;;  %s237_s23 = int_to_ptr.vmem [resolvable:$true] %s236_s23 }
  0x18   : > { %s1364_s9 = scalar_lea.vmem %s237_s23, 6144  ;;  %p1372_p6 = scmp.lt.s32.totalorder %s237_s23, %s237_s23 }
  0x19   : > { %p1355_p1 = pneg %p1640_p0  ;;  %p1365_p2 = scmp.ne.s32.totalorder %s237_s23, %s1364_s9 }
  0x1a   : > { %p1373_p7 = scmp.lt.s32.totalorder %s1364_s9, %s1364_s9 }
  0x1b   : > { %p1367_p4 = pnand %p1365_p2, %p1355_p1 }
  0x1c   : > { %p1374_p9 = por %p1373_p7, %p1372_p6 }
  0x1d   : > { %p1368_p5 = pneg %p1367_p4 }
  0x1f   : > { %p1375_p11 = pnand %p1374_p9, %p1368_p5 }
  0x21   : > { %1378 = shalt.err (!%p1375_p11)
}
  0x22   : > { %s1508_s13 = smov 192   ;;  %s1509_s14 = smov 12  }
  0x23   : > { %1213 = dma.hbm_to_vmem [thread:$0]  (!%p1640_p0), %s1868_s2, 6144, %s237_s23, [#allocation3], %s1508_s13, %s1508_s13, %s1509_s14  }
  0x24   : > { %s1510_s22 = smov [#allocation5]  }
  0x25   : > { %s249_s12 = sshll.u32 %s1510_s22, 4  ;;  %s250_s12 = int_to_ptr.vmem [resolvable:$true] %s249_s12 }
  0x26   : > { %s1390_s11 = scalar_lea.vmem %s250_s12, 2048  ;;  %p1398_p5 = scmp.lt.s32.totalorder %s250_s12, %s250_s12 }
  0x27   : > { %p1391_p13 = scmp.ne.s32.totalorder %s250_s12, %s1390_s11  ;;  %p1399_p6 = scmp.lt.s32.totalorder %s1390_s11, %s1390_s11 }
  0x29   : > { %p1393_p2 = pnand %p1391_p13, %p1355_p1  ;;  %p1400_p7 = por %p1399_p6, %p1398_p5 }
  0x2b   : > { %p1394_p4 = pneg %p1393_p2 }
  0x2d   : > { %p1401_p9 = pnand %p1400_p7, %p1394_p4 }
  0x2f   : > { %1404 = shalt.err (!%p1401_p9)
}
  0x30   : > { %s1511_s9 = smov 64   ;;  %s1512_s30 = smov 4  }
  0x31   : > { %1216 = dma.hbm_to_vmem [thread:$0]  (!%p1640_p0), %s1869_s3, 2048, %s250_s12, [#allocation6], %s1511_s9, %s1511_s9, %s1512_s30  }
  0x32   : > { %288 = sbr.rel (%p1625_p10) target bundleno = 1252 (0x4e4), region = 48 }
  0x37   : > { %1464 = dma.done.wait (%p1629_p12), [#allocation3], 6144  }
  0x38   : > { %1466 = vsyncadd (%p1629_p12), [#allocation3], 4294961152 }
  0x39   : > { %1468 = dma.done.wait (%p1629_p12), [#allocation6], 2048  }
  0x3a   : > { %1470 = vsyncadd (%p1629_p12), [#allocation6], 4294965248  ;;  %p326_p1 = scmp.lt.s32.totalorder %s1493_s28, 1  ;;  %p335_p0 = scmp.eq.s32.totalorder %s1489_s27, 0  ;;  %v343_v0 = vlaneseq  ;;  %v1513_v10 = vmov 0.0   ;;  %v1514_v31 = vmov 0  }
  0x3b   : > { %s1103_s22 = smul.u32 192, %s1489_s27  ;;  %1134 = vmatprep.subr.bf16.mxu1 %v1513_v10  ;;  %572 = vmatprep.mubr.bf16.mxu0 %v1514_v31  ;;  %vm1515_vm2 = vmmov 0   ;;  %s1054_s17 = sshll.u32 %s1489_s27, 2  ;;  %v1331_v51 = vld [vmem:[%s1871_s5 + $0x38] sm:$0xff]   ;;  %v1332_v53 = vld [vmem:[%s1871_s5 + $0x30] sm:$0xff]   ;;  %v1333_v54 = vld [vmem:[%s1871_s5 + $0x28] sm:$0xff]  }
  0x3c   : > { %s327_s30 = scalar_select %p326_p1, %s1493_s28, 1  ;;  %v1675_v1 = vshrl.u32 %v343_v0, 7  ;;  %1150 = vmatprep.mubr.msk.bf16.mxu1 %vm1515_vm2, %v1513_v10  ;;  %v1334_v55 = vld [vmem:[%s1871_s5 + $0x20] sm:$0xff]   ;;  %v1335_v56 = vld [vmem:[%s1871_s5 + $0x18] sm:$0xff]   ;;  %v1336_v57 = vld [vmem:[%s1871_s5 + $0x10] sm:$0xff]   ;;  %vm756_vm3 = vcmask 1043456  }
  0x3d   : > { %s338_s11 = scalar_select %p335_p0, 1, 0  ;;  %v1337_v58 = vld [vmem:[%s1871_s5 + $0x8] sm:$0xff]   ;;  %v1338_v59 = vld [vmem:[%s1871_s5] sm:$0xff]   ;;  %vm731_vm4 = vcmask 64512  }
  0x3e   : > { %s1052_s12 = sshll.u32 %s327_s30, 3  ;;  %v1684_v3 = vsub.s32 0, %v1675_v1  ;;  %vm345_vm1 = vcmp.eq.s32.totalorder %v1675_v1, 0  ;;  %s1693_s9 = scalar_lea.vmem [#allocation2], %s1103_s22  ;;  %v373_v44 = vsub.s32 1, %v1675_v1 }
  0x3f   : > { %s329_s13 = scalar_lea.vmem %s1866_s0, %s1052_s12  ;;  %s333_s20 = scalar_lea.vmem %s1867_s1, %s1052_s12  ;;  %v339_v2 = vstv %s338_s11  ;;  %v1299_v11 = vld [vmem:[%s1693_s9 + $0xac] ss:$12 sps:$4 sm:$0xff]   ;;  %v1301_v12 = vld [vmem:[%s1693_s9 + $0xa8] ss:$12 sps:$4 sm:$0xff]   ;;  %v1302_v13 = vld [vmem:[%s1693_s9 + $0xb0] ss:$12 sps:$4 sm:$0xff]  }
  0x40   : > { %vm340_vm0 = vcmp.eq.s32.totalorder %v339_v2, 1  ;;  %v336_v4 = vld [vmem:[%s329_s13] sm:$0xff]  ;;  %540 = vmatprep.subr.bf16.mxu0 %v1299_v11  ;;  %v1305_v15 = vld [vmem:[%s1693_s9 + $0x90] ss:$12 sps:$4 sm:$0xff]   ;;  %1135 = vmatpush3.bf16.msra.mxu1 %v1302_v13  ;;  %v1314_v26 = vld [vmem:[%s1693_s9 + $0x68] ss:$12 sps:$4 sm:$0xff]   ;;  %s352_s11 = scalar_lea.vmem %s1870_s4, %s1054_s17 }
  0x41   : > { %v337_v5 = vld [vmem:[%s333_s20] sm:$0xff]  ;;  %541 = vmatpush1.bf16.msra.mxu0 %v1301_v12  ;;  %1136 = vmatprep.subr.bf16.mxu1 %v1513_v10  ;;  %v1307_v21 = vld [vmem:[%s1693_s9 + $0x7c] ss:$12 sps:$4 sm:$0xff]   ;;  %v1315_v27 = vld [vmem:[%s1693_s9 + $0x4c] ss:$12 sps:$4 sm:$0xff]   ;;  %s1104_s18 = sshll.u32 %s1489_s27, 6 }
  0x42   : > { %v1687_v6 = vsel %vm340_vm0, %v336_v4, %v337_v5  ;;  %v342_v7 = vsel %vm340_vm0, %v337_v5, %v336_v4  ;;  %v1303_v14 = vld [vmem:[%s1693_s9 + $0x94] ss:$12 sps:$4 sm:$0xff]   ;;  %v1306_v16 = vld [vmem:[%s1693_s9 + $0x98] ss:$12 sps:$4 sm:$0xff]   ;;  %v1318_v29 = vld [vmem:[%s1693_s9 + $0x50] ss:$12 sps:$4 sm:$0xff]  }
  0x43   : > { %v349_v8 = vrot.slane %v1687_v6, %v1684_v3  ;;  %542 = vmatprep.subr.bf16.mxu0 %v1303_v14  ;;  %v1309_v22 = vld [vmem:[%s1693_s9 + $0x78] ss:$12 sps:$4 sm:$0xff]   ;;  %v1310_v23 = vld [vmem:[%s1693_s9 + $0x80] ss:$12 sps:$4 sm:$0xff]   ;;  %v1317_v28 = vld [vmem:[%s1693_s9 + $0x48] ss:$12 sps:$4 sm:$0xff]  }
  0x44   : > { %1137 = vmatpush3.bf16.msra.mxu1 %v1306_v16  ;;  %v1311_v24 = vld [vmem:[%s1693_s9 + $0x64] ss:$12 sps:$4 sm:$0xff]   ;;  %v1313_v25 = vld [vmem:[%s1693_s9 + $0x60] ss:$12 sps:$4 sm:$0xff]   ;;  %v1323_v34 = vld [vmem:[%s1693_s9 + $0x1c] ss:$12 sps:$4 sm:$0xff]  }
  0x45   : > { %v350_v9 = vsel %vm345_vm1, %v349_v8, %v342_v7  ;;  %543 = vmatpush1.bf16.msra.mxu0 %v1305_v15  ;;  %1138 = vmatprep.subr.bf16.mxu1 %v1513_v10  ;;  %v1319_v30 = vld [vmem:[%s1693_s9 + $0x34] ss:$12 sps:$4 sm:$0xff]   ;;  %v1321_v32 = vld [vmem:[%s1693_s9 + $0x30] ss:$12 sps:$4 sm:$0xff]   ;;  %v1322_v33 = vld [vmem:[%s1693_s9 + $0x38] ss:$12 sps:$4 sm:$0xff]  }
  0x46   : > { %354 = vadd.xlane.f32.xlu0 %v350_v9  ;;  %544 = vmatprep.subr.bf16.mxu0 %v1307_v21  ;;  %v1325_v35 = vld [vmem:[%s1693_s9 + $0x18] ss:$12 sps:$4 sm:$0xff]   ;;  %v1326_v36 = vld [vmem:[%s1693_s9 + $0x20] ss:$12 sps:$4 sm:$0xff]   ;;  %v1330_v39 = vld [vmem:[%s1693_s9 + $0x8] ss:$12 sps:$4 sm:$0xff]  }
  0x47   : > { %v1327_v37 = vld [vmem:[%s1693_s9 + $0x4] ss:$12 sps:$4 sm:$0xff]   ;;  %v1329_v38 = vld [vmem:[%s1693_s9] ss:$12 sps:$4 sm:$0xff]   ;;  %s1783_s20 = scalar_lea.vmem [#allocation5], %s1104_s18  ;;  %s324_s22 = sand.u32 1, %s1481_s25  }
  0x48   : > { %1139 = vmatpush3.bf16.msra.mxu1 %v1310_v23  ;;  %v1734_v43 = vld [vmem:[%s352_s11] sm:$0x7]  ;;  %s1099_s9 = sshll.u32 %s1489_s27, 1  ;;  %s325_s30 = scalar_lea.vmem [#allocation7], %s324_s22 }
  0x49   : > { %545 = vmatpush1.bf16.msra.mxu0 %v1309_v22  ;;  %1140 = vmatprep.subr.bf16.mxu1 %v1513_v10  ;;  %v369_v45 = vrot.slane %v1734_v43, %v1684_v3  ;;  %v374_v48 = vrot.slane %v1734_v43, %v373_v44  ;;  %s931_s17 = sadd.s32 %s1493_s28, %s1099_s9  ;;  %s935_s11 = sshll.u32 %s325_s30, 4  ;;  %s1816_s11 = int_to_ptr.vmem [resolvable:$true] %s935_s11 }
  0x4a   : > { %546 = vmatprep.subr.bf16.mxu0 %v1311_v24  ;;  %s1100_s23 = sshll.u32 %s931_s17, 4  ;;  %s921_s27 = scalar_lea.sflag [#allocation4], %s324_s22 }
  0x4b   : > { %s1814_s10 = scalar_lea.hbm %s1873_s7, %s1100_s23  ;;  %s1405_s28 = scalar_lea.vmem %s1816_s11, 16 }
  0x4c   : > { %1141 = vmatpush3.bf16.msra.mxu1 %v1314_v26  ;;  %p1406_p10 = scmp.ne.s32.totalorder %s1816_s11, %s1405_s28  ;;  %s1516_s13 = smov [#allocation7]  }
  0x4d   : > { %547 = vmatpush1.bf16.msra.mxu0 %v1313_v25  ;;  %1142 = vmatprep.subr.bf16.mxu1 %v1513_v10  ;;  %s1409_s14 = sshll.u32 %s1516_s13, 4  ;;  %s1410_s14 = int_to_ptr.vmem [resolvable:$false] %s1409_s14 }
  0x4e   : > { %548 = vmatprep.subr.bf16.mxu0 %v1315_v27  ;;  %p1407_p12 = pnand %p1406_p10, %p1609_p3  ;;  %s1411_s18 = scalar_lea.vmem %s1410_s14, 32 }
  0x4f   : > { %p1412_p13 = scmp.lt.s32.totalorder %s1816_s11, %s1410_s14  ;;  %p1413_p2 = scmp.lt.s32.totalorder %s1411_s18, %s1405_s28 }
  0x50   : > { %1143 = vmatpush3.bf16.msra.mxu1 %v1318_v29  ;;  %p1408_p11 = pneg %p1407_p12 }
  0x51   : > { %549 = vmatpush1.bf16.msra.mxu0 %v1317_v28  ;;  %1144 = vmatprep.subr.bf16.mxu1 %v1513_v10  ;;  %p1414_p4 = por %p1413_p2, %p1412_p13 }
  0x52   : > { %550 = vmatprep.subr.bf16.mxu0 %v1319_v30 }
  0x53   : > { %p1415_p5 = pnand %p1414_p4, %p1408_p11 }
  0x54   : > { %1145 = vmatpush3.bf16.msra.mxu1 %v1322_v33 }
  0x55   : > { %551 = vmatpush1.bf16.msra.mxu0 %v1321_v32  ;;  %1146 = vmatprep.subr.bf16.mxu1 %v1513_v10 }
  0x56   : > { %552 = vmatprep.subr.bf16.mxu0 %v1323_v34  ;;  %v1339_v34 = vld [vmem:[%s1783_s20 + $0x38] sm:$0xff]  }
  0x58   : > { %1147 = vmatpush3.bf16.msra.mxu1 %v1326_v36  ;;  %v1340_v36 = vld [vmem:[%s1783_s20 + $0x30] sm:$0xff]  }
  0x59   : > { %553 = vmatpush1.bf16.msra.mxu0 %v1325_v35  ;;  %1148 = vmatprep.subr.bf16.mxu1 %v1513_v10 }
  0x5a   : > { %554 = vmatprep.subr.bf16.mxu0 %v1327_v37  ;;  %v1341_v37 = vld [vmem:[%s1783_s20 + $0x28] sm:$0xff]  }
  0x5c   : > { %1149 = vmatpush3.bf16.msra.mxu1 %v1330_v39  ;;  %v1343_v39 = vld [vmem:[%s1783_s20 + $0x18] sm:$0xff]  }
  0x5d   : > { %555 = vmatpush1.bf16.msra.mxu0 %v1329_v38  ;;  %1174 = vmatprep.subr.bf16.mxu1 %v1513_v10  ;;  %v1342_v38 = vld [vmem:[%s1783_s20 + $0x20] sm:$0xff]  }
  0x5e   : > { %1154 = vmatprep.subr.bf16.mxu0 %v1513_v10 }
  0xcf   : > { %v355_v17 = vpop.xlane.xlu0 %354 }
  0xd0   : > { %v357_v18 = vmul.f32 0.0078125, %v355_v17 }
  0xd2   : > { %v358_v19 = vsub.f32 %v350_v9, %v357_v18  ;;  %v752_v9 = vld [vmem:[%s1872_s6] sm:$0xf] }
  0xd3   : > { %v758_v11 = vsel %vm756_vm3, %v752_v9, 0 }
  0xd4   : > { %v359_v20 = vmul.f32 %v358_v19, %v358_v19 }
  0xd6   : > { %360 = vadd.xlane.f32.xlu0 %v359_v20 }
 0x15f   : > { %v361_v40 = vpop.xlane.xlu0 %360 }
 0x160   : > { %v362_v41 = vmul.f32 0.0078125, %v361_v40  ;;  %v1344_v40 = vld [vmem:[%s1783_s20 + $0x10] sm:$0xff]  }
 0x162   : > { %v363_v42 = vadd.f32 1e-05, %v362_v41  ;;  %v1345_v41 = vld [vmem:[%s1783_s20 + $0x8] sm:$0xff]  }
 0x164   : > { %1347 = vrsqrt.f32 %v363_v42  ;;  %v1346_v42 = vld [vmem:[%s1783_s20] sm:$0xff]  }
 0x171   : > { %v1348_v46 = vpop.eup %1347 }
 0x172   : > { %v365_v47 = vmul.f32 %v1348_v46, %v358_v19 }
 0x174   : > { %v370_v49 = vmul.f32 %v369_v45, %v365_v47 }
 0x176   : > { %v375_v50 = vadd.f32 %v374_v48, %v370_v49 }
 0x178   : > { %v376_v52 = vpack.c.bf16 %v375_v50, %v375_v50 }
 0x17a   : > { %573 = vmatmul.mubr.bf16.vlgmr.msra.gmra.mxu0 %v376_v52  ;;  %1151 = vmatmul.mubr.bf16.vlgmr.msra.gmra.mxu1 %v376_v52 }
 0x17b   : > { %1155 = vmatpush3.bf16.msra.mxu0 %v1331_v51  ;;  %1170 = vmatprep.mubr.msk.bf16.mxu0 %vm1515_vm2, %v1513_v10 }
 0x17c   : > { %1156 = vmatprep.subr.bf16.mxu0 %v1513_v10  ;;  %1176 = vmatprep.mubr.msk.bf16.mxu1 %vm1515_vm2, %v1513_v10 }
 0x17d   : > { %1175 = vmatpush3.bf16.msra.mxu1 %v758_v11 }
 0x17e   : > { %1180 = vmatprep.subr.bf16.mxu1 %v1513_v10 }
 0x17f   : > { %1157 = vmatpush3.bf16.msra.mxu0 %v1332_v53 }
 0x180   : > { %1158 = vmatprep.subr.bf16.mxu0 %v1513_v10 }
 0x183   : > { %1159 = vmatpush3.bf16.msra.mxu0 %v1333_v54 }
 0x184   : > { %1160 = vmatprep.subr.bf16.mxu0 %v1513_v10 }
 0x187   : > { %1161 = vmatpush3.bf16.msra.mxu0 %v1334_v55 }
 0x188   : > { %1162 = vmatprep.subr.bf16.mxu0 %v1513_v10 }
 0x18b   : > { %1163 = vmatpush3.bf16.msra.mxu0 %v1335_v56 }
 0x18c   : > { %1164 = vmatprep.subr.bf16.mxu0 %v1513_v10 }
 0x18f   : > { %1165 = vmatpush3.bf16.msra.mxu0 %v1336_v57 }
 0x190   : > { %1166 = vmatprep.subr.bf16.mxu0 %v1513_v10 }
 0x193   : > { %1167 = vmatpush3.bf16.msra.mxu0 %v1337_v58 }
 0x194   : > { %1168 = vmatprep.subr.bf16.mxu0 %v1513_v10 }
 0x197   : > { %1169 = vmatpush3.bf16.msra.mxu0 %v1338_v59 }
 0x23a   : > { %v574_v60 = vpop.f32.mrf.mxu0  ;;  %v1775_v61 = vpop.f32.mrf.mxu1 }
 0x23b   : > { %v624_v62 = vrot.slane %v574_v60, %v1684_v3 }
 0x23c   : > { %v576_v63 = vpop.f32.mrf.mxu0  ;;  %v1152_v0 = vpop.f32.mrf.mxu1 }
 0x23d   : > { %v625_v1 = vmul.f32 %v624_v62, %v576_v63 }
 0x23e   : > { %v578_v2 = vpop.f32.mrf.mxu0  ;;  %v618_v4 = vpop.f32.mrf.mxu1 }
 0x23f   : > { %v626_v5 = vpack.c.bf16 %v625_v1, %v625_v1 }
 0x240   : > { %v579_v7 = vpop.f32.mrf.mxu0  ;;  %v1153_v8 = vpop.f32.mrf.mxu1 }
 0x241   : > { %1171 = vmatmul.mubr.bf16.vlgmr.msra.gmra.mxu0 %v626_v5 }
 0x301   : > { %v725_v3 = vpop.f32.mrf.mxu0 }
 0x302   : > { %v732_v12 = vsel %vm731_vm4, %v725_v3, -inf }
 0x303   : > { %v733_v13 = vrot.slane %v732_v12, 4  ;;  %v1172_v14 = vpop.f32.mrf.mxu0 }
 0x305   : > { %v734_v15 = vmax.f32 %v732_v12, %v733_v13  ;;  %v728_v16 = vpop.f32.mrf.mxu0 }
 0x307   : > { %v735_v17 = vrot.slane %v734_v15, 2  ;;  %v1173_v18 = vpop.f32.mrf.mxu0 }
 0x309   : > { %v736_v19 = vmax.f32 %v734_v15, %v735_v17 }
 0x30b   : > { %v737_v20 = vrot.slane %v736_v19, 1 }
 0x30d   : > { %v738_v21 = vmax.f32 %v736_v19, %v737_v20 }
 0x30f   : > { %v739_v22 = vsub.f32 %v725_v3, %v738_v21 }
 0x311   : > { %v740_v23 = vmul.f32 1.442695, %v739_v22 }
 0x313   : > { %1349 = vpow2.f32 %v740_v23 }
 0x320   : > { %v1350_v24 = vpop.eup %1349 }
 0x321   : > { %v742_v25 = vsel %vm731_vm4, %v1350_v24, 0.0 }
 0x322   : > { %v743_v26 = vrot.slane %v742_v25, 4 }
 0x324   : > { %v744_v27 = vadd.f32 %v743_v26, %v742_v25 }
 0x326   : > { %v745_v28 = vrot.slane %v744_v27, 2 }
 0x328   : > { %v746_v29 = vadd.f32 %v745_v28, %v744_v27 }
 0x32a   : > { %v747_v30 = vrot.slane %v746_v29, 1 }
 0x32c   : > { %v748_v31 = vadd.f32 %v747_v30, %v746_v29 }
 0x32e   : > { %1351 = vrcp.f32 %v748_v31 }
 0x33b   : > { %v1352_v32 = vpop.eup %1351 }
 0x33c   : > { %v750_v33 = vmul.f32 %v1352_v32, %v1350_v24 }
 0x33e   : > { %v751_v35 = vpack.c.bf16 %v750_v33, %v750_v33 }
 0x340   : > { %1177 = vmatmul.mubr.msk.bf16.vlgmr.msra.gmra.mxu1 %vm731_vm4, %v751_v35 }
 0x341   : > { %1181 = vmatpush3.bf16.msra.mxu1 %v1339_v34  ;;  %1196 = vmatprep.mubr.msk.bf16.mxu1 %vm1515_vm2, %v1513_v10 }
 0x342   : > { %1182 = vmatprep.subr.bf16.mxu1 %v1513_v10 }
 0x345   : > { %1183 = vmatpush3.bf16.msra.mxu1 %v1340_v36 }
 0x346   : > { %1184 = vmatprep.subr.bf16.mxu1 %v1513_v10 }
 0x349   : > { %1185 = vmatpush3.bf16.msra.mxu1 %v1341_v37 }
 0x34a   : > { %1186 = vmatprep.subr.bf16.mxu1 %v1513_v10 }
 0x34d   : > { %1187 = vmatpush3.bf16.msra.mxu1 %v1342_v38 }
 0x34e   : > { %1188 = vmatprep.subr.bf16.mxu1 %v1513_v10 }
 0x351   : > { %1189 = vmatpush3.bf16.msra.mxu1 %v1343_v39 }
 0x352   : > { %1190 = vmatprep.subr.bf16.mxu1 %v1513_v10 }
 0x355   : > { %1191 = vmatpush3.bf16.msra.mxu1 %v1344_v40 }
 0x356   : > { %1192 = vmatprep.subr.bf16.mxu1 %v1513_v10 }
 0x359   : > { %1193 = vmatpush3.bf16.msra.mxu1 %v1345_v41 }
 0x35a   : > { %1194 = vmatprep.subr.bf16.mxu1 %v1513_v10  ;;  %v876_v10 = vrot.slane %v1734_v43, 2 }
 0x35d   : > { %1195 = vmatpush3.bf16.msra.mxu1 %v1346_v42 }
 0x400   : > { %v794_v44 = vpop.f32.mrf.mxu1 }
 0x401   : > { %v800_v45 = vmul.f32 %v794_v44, %v1775_v61 }
 0x402   : > { %v1178_v46 = vpop.f32.mrf.mxu1 }
 0x403   : > { %v801_v47 = vrot.slane %v800_v45, 4 }
 0x404   : > { %v797_v48 = vpop.f32.mrf.mxu1 }
 0x405   : > { %v802_v49 = vadd.f32 %v801_v47, %v800_v45 }
 0x406   : > { %v1179_v50 = vpop.f32.mrf.mxu1 }
 0x407   : > { %v803_v51 = vrot.slane %v802_v49, 2 }
 0x409   : > { %v804_v52 = vadd.f32 %v803_v51, %v802_v49 }
 0x40b   : > { %v805_v53 = vrot.slane %v804_v52, 1 }
 0x40d   : > { %v806_v54 = vadd.f32 %v805_v53, %v804_v52 }
 0x40f   : > { %v807_v55 = vpack.c.bf16 %v806_v54, %v806_v54 }
 0x411   : > { %1197 = vmatmul.mubr.bf16.vlgmr.msra.gmra.mxu1 %v807_v55 }
 0x4d1   : > { %v912_v56 = vpop.f32.mrf.mxu1 }
 0x4d2   : > { %v913_v57 = vadd.f32 %v912_v56, %v876_v10 }
 0x4d3   : > { %v1198_v58 = vpop.f32.mrf.mxu1 }
 0x4d4   : > { %v918_v59 = vadd.f32 %v913_v57, %v1687_v6 }
 0x4d5   : > { %v915_v43 = vpop.f32.mrf.mxu1 }
 0x4d6   : > { %919 = vst [vmem:[%s325_s30] sm:$0x1] %v918_v59 }
 0x4d7   : > { %v1199_v60 = vpop.f32.mrf.mxu1 }
 0x4d8   : > { %1418 = shalt.err (!%p1415_p5)
}
 0x4d9   : > { %s1419_s20 = scalar_lea.hbm %s1814_s10, 16  ;;  %s1423_s17 = scalar_lea.hbm %s1873_s7, 64 }
 0x4da   : > { %p1420_p6 = scmp.ne.s32.totalorder %s1814_s10, %s1419_s20  ;;  %p1424_p1 = scmp.lt.s32.totalorder %s1814_s10, %s1873_s7 }
 0x4db   : > { %p1425_p0 = scmp.lt.s32.totalorder %s1423_s17, %s1419_s20 }
 0x4dc   : > { %p1421_p7 = pnand %p1420_p6, %p1609_p3 }
 0x4dd   : > { %p1426_p10 = por %p1425_p0, %p1424_p1 }
 0x4de   : > { %p1422_p9 = pneg %p1421_p7 }
 0x4e0   : > { %p1427_p12 = pnand %p1426_p10, %p1422_p9 }
 0x4e2   : > { %1430 = shalt.err (!%p1427_p12)
}
 0x4e3   : > { %1208 = dma.vmem_to_hbm [thread:$0]  (%p1609_p3), %s1816_s11, 16, %s1814_s10, %s921_s27  }
 0x4e4 PF: > { %p1225_p11 = scmp.ge.s32.totalorder %s1505_s8, 2  ;;  %s947_s12 = sand.u32 1, %s1477_s24  }
 0x4e5   : > { %s948_s19 = scalar_lea.sflag [#allocation4], %s947_s12 }
 0x4e6   : > { %p1218_p13 = pnand %p1225_p11, %p1618_p8 }
 0x4e8   : > { %p1219_p2 = pneg %p1218_p13 }
 0x4ea   : > { %1472 = dma.done.wait (%p1219_p2), %s948_s19, 16  }
 0x4eb   : > { %1474 = vsyncadd (%p1219_p2), %s948_s19, 4294967280  ;;  %s22_s8 = sadd.s32 1, %s1505_s8   ;;  %s1885_s28 = sld [smem:[#allocation11_spill]] }
 0x4ec   : > { %p19_p4 = scmp.ge.s32.totalorder %s22_s8, 6   ;;  %s1886_s15 = sld [smem:[#allocation12_spill]] }
 0x4ed   : > { %s1887_s30 = sld [smem:[#allocation13_spill]]  ;;  %s1888_s24 = smov %s1481_s25 }
 0x4ee   : > { %s1889_s25 = smov %s1485_s26  ;;  %s1890_s26 = smov %s1636_s21 }
 0x4ef   : > { %s1891_s27 = smov %s1497_s29  ;;  %21 = sbr.rel (!%p19_p4) target bundleno = 7 (0x7), region = 98 }
 0x4f2   : > { %s1892_s29 = smov %s1886_s15 }
 0x4f4   :  { %952 = vsyncpa [#allocation3], 1 }
 0x4f5   :  { %954 = vsyncpa [#allocation3 + $0x1], 1 }
 0x4f6   :  { %955 = vsyncpa [#allocation6], 1 }
 0x4f7   :  { %956 = vsyncpa [#allocation4], 1 }
 0x4f8   :  { %958 = vsyncpa [#allocation4 + $0x1], 1 }

</bundles_post_ra>
